<compile_context>
chip_gen: v7x
topology: tpu7x:2x2x1
jax: 0.10.0
libtpu: 0.0.40
codegen_flags: <defaults>
</compile_context>

<pallas_src>
import functools

import jax
import jax.numpy as jnp
from jax.experimental import pallas as pl
from jax.experimental.pallas import tpu as pltpu

IN_DIM = 28 * 28      # 784
H1 = 64
H2 = 24
OUT_DIM = 10


def _round_up(n, m):
    return ((n + m - 1) // m) * m


def _cdiv(a, b):
    return -(-a // b)


def mlp_kernel(x_ref, w1_ref, b1_ref, w2_ref, b2_ref, w3_ref, b3_ref, o_ref):
    # Layer 1: (tb, 784) f32 -> bf16 in-VMEM, @ (784, 64) bf16 -> f32 acc; bias + ReLU in f32.
    x_bf = x_ref[...].astype(jnp.bfloat16)
    h1 = jnp.dot(x_bf, w1_ref[...], preferred_element_type=jnp.float32)
    h1 = jnp.maximum(h1 + b1_ref[...], 0.0)

    # Layer 2: (tb, 64) bf16 @ (64, 24) bf16 -> f32 acc; bias + ReLU in f32.
    h2 = jnp.dot(h1.astype(jnp.bfloat16), w2_ref[...],
                 preferred_element_type=jnp.float32)
    h2 = jnp.maximum(h2 + b2_ref[...], 0.0)

    # Layer 3: (tb, 24) bf16 @ (24, 10) bf16 -> f32 acc; bias + ReLU in f32
    # (the original PyTorch Net applies ReLU to fc3's output too).
    h3 = jnp.dot(h2.astype(jnp.bfloat16), w3_ref[...],
                 preferred_element_type=jnp.float32)
    h3 = jnp.maximum(h3 + b3_ref[...], 0.0)

    o_ref[...] = h3.astype(o_ref.dtype)


@functools.partial(jax.jit, static_argnames=("tile_b",))
def mlp_forward(x, w1, b1, w2, b2, w3, b3, *, tile_b=1024):
    """x: (B, 784) f32. Weights (in, out) f32, biases (1, out) f32. Returns (B, 10) f32."""
    B = x.shape[0]

    # Pick tile count first, then size the tile to minimize remainder padding.
    num_tiles = max(1, _cdiv(B, tile_b))
    if num_tiles == 1 and B >= 16:
        # Guarantee >= 2 batch tiles so v7x megacore can split the "parallel" axis
        # across both TensorCores (no-op cost on single-core v5e/v6e).
        num_tiles = 2
    tb = _round_up(_cdiv(B, num_tiles), 8)      # sublane rule: multiple of 8
    b_pad = num_tiles * tb

    # Only batch padding (if any); no K padding, no bf16 copy of x in HBM.
    x_p = x if b_pad == B else jnp.pad(x, ((0, b_pad - B), (0, 0)))

    # Weights are tiny (<125 KB total as bf16): cast once in the wrapper.
    w1_bf = w1.astype(jnp.bfloat16)
    w2_bf = w2.astype(jnp.bfloat16)
    w3_bf = w3.astype(jnp.bfloat16)

    grid = (num_tiles,)

    out = pl.pallas_call(
        mlp_kernel,
        out_shape=jax.ShapeDtypeStruct((b_pad, OUT_DIM), jnp.float32),
        grid_spec=pltpu.PrefetchScalarGridSpec(
            num_scalar_prefetch=0,
            grid=grid,
            in_specs=[
                pl.BlockSpec((tb, IN_DIM), lambda i: (i, 0)),   # x tile (f32, full K)
                pl.BlockSpec((IN_DIM, H1), lambda i: (0, 0)),   # w1 (resident)
                pl.BlockSpec((1, H1), lambda i: (0, 0)),        # b1 (resident)
                pl.BlockSpec((H1, H2), lambda i: (0, 0)),       # w2 (resident)
                pl.BlockSpec((1, H2), lambda i: (0, 0)),        # b2 (resident)
                pl.BlockSpec((H2, OUT_DIM), lambda i: (0, 0)),  # w3 (resident)
                pl.BlockSpec((1, OUT_DIM), lambda i: (0, 0)),   # b3 (resident)
            ],
            out_specs=pl.BlockSpec((tb, OUT_DIM), lambda i: (i, 0)),  # narrow writeback
        ),
        compiler_params=pltpu.CompilerParams(
            dimension_semantics=("parallel",),
        ),
    )(x_p, w1_bf, b1, w2_bf, b2, w3_bf, b3)

    return out if b_pad == B else out[:B]


def init_params(key):
    """Deterministic init mimicking PyTorch nn.Linear default U(-1/sqrt(fan_in), 1/sqrt(fan_in))."""
    dims = [(IN_DIM, H1), (H1, H2), (H2, OUT_DIM)]
    params = []
    for fan_in, fan_out in dims:
        kw, kb, key = jax.random.split(key, 3)
        bound = 1.0 / jnp.sqrt(float(fan_in))
        # Stored as (in, out): transpose of PyTorch's (out, in) weight layout.
        w = jax.random.uniform(kw, (fan_in, fan_out), jnp.float32, -bound, bound)
        b = jax.random.uniform(kb, (1, fan_out), jnp.float32, -bound, bound)
        params += [w, b]
    return params


def reference_forward_bf16(x, w1, b1, w2, b2, w3, b3):
    """Pure-JAX reference with the SAME bf16-operand / f32-accumulate recipe."""
    h = jnp.dot(x.astype(jnp.bfloat16), w1.astype(jnp.bfloat16),
                preferred_element_type=jnp.float32)
    h = jnp.maximum(h + b1, 0.0)
    h = jnp.dot(h.astype(jnp.bfloat16), w2.astype(jnp.bfloat16),
                preferred_element_type=jnp.float32)
    h = jnp.maximum(h + b2, 0.0)
    h = jnp.dot(h.astype(jnp.bfloat16), w3.astype(jnp.bfloat16),
                preferred_element_type=jnp.float32)
    h = jnp.maximum(h + b3, 0.0)
    return h


def reference_forward_f32(x, w1, b1, w2, b2, w3, b3):
    h = jnp.maximum(x @ w1 + b1, 0.0)
    h = jnp.maximum(h @ w2 + b2, 0.0)
    h = jnp.maximum(h @ w3 + b3, 0.0)
    return h


if __name__ == "__main__":
    key = jax.random.PRNGKey(0)
    key_x, key_p = jax.random.split(key)

    B = 8  # MNIST-style input (B, 1, 28, 28) -> view -> (B, 784)
    x_img = jax.random.normal(key_x, (B, 1, 28, 28), jnp.float32)
    x = x_img.reshape(-1, IN_DIM)  # mirrors x.view(-1, 28*28)

    w1, b1, w2, b2, w3, b3 = init_params(key_p)

    out = mlp_forward(x, w1, b1, w2, b2, w3, b3)
    out = jax.block_until_ready(out)
    assert out.shape == (B, OUT_DIM)

    # Tight check against a reference using the same bf16-operand recipe.
    ref_bf16 = reference_forward_bf16(x, w1, b1, w2, b2, w3, b3)
    assert jnp.allclose(out, ref_bf16, atol=5e-3, rtol=5e-3), "mismatch vs bf16 reference"

    # Loose sanity check against the full-f32 PyTorch-equivalent forward.
    ref_f32 = reference_forward_f32(x, w1, b1, w2, b2, w3, b3)
    assert jnp.allclose(out, ref_f32, atol=5e-2, rtol=5e-2), "mismatch vs f32 reference"

    print("KERNEL_OK")
</pallas_src>

<mosaic_0001>
module attributes {stable_mosaic.version = 11 : i64} {
  func.func @mlp_kernel(%arg0: i32, %arg1: memref<8x784xf32, #tpu.memory_space<vmem>>, %arg2: memref<784x64xbf16, #tpu.memory_space<vmem>>, %arg3: memref<1x64xf32, #tpu.memory_space<vmem>>, %arg4: memref<64x24xbf16, #tpu.memory_space<vmem>>, %arg5: memref<1x24xf32, #tpu.memory_space<vmem>>, %arg6: memref<24x10xbf16, #tpu.memory_space<vmem>>, %arg7: memref<1x10xf32, #tpu.memory_space<vmem>>, %arg8: memref<8x10xf32, #tpu.memory_space<vmem>>) attributes {dimension_semantics = [#tpu.dimension_semantics<parallel>], iteration_bounds = array<i64: 1>, scalar_prefetch = 0 : i64, scratch_operands = 0 : i64, tpu.core_type = #tpu.core_type<tc>, window_params = [{transform_indices = @transform_0, window_bounds = array<i64: 8, 784>}, {pipeline_mode = #tpu.pipeline_mode<synchronous>, transform_indices = @transform_1, window_bounds = array<i64: 784, 64>}, {pipeline_mode = #tpu.pipeline_mode<synchronous>, transform_indices = @transform_2, window_bounds = array<i64: 1, 64>}, {pipeline_mode = #tpu.pipeline_mode<synchronous>, transform_indices = @transform_3, window_bounds = array<i64: 64, 24>}, {pipeline_mode = #tpu.pipeline_mode<synchronous>, transform_indices = @transform_4, window_bounds = array<i64: 1, 24>}, {pipeline_mode = #tpu.pipeline_mode<synchronous>, transform_indices = @transform_5, window_bounds = array<i64: 24, 10>}, {pipeline_mode = #tpu.pipeline_mode<synchronous>, transform_indices = @transform_6, window_bounds = array<i64: 1, 10>}, {transform_indices = @transform_7, window_bounds = array<i64: 8, 10>}]} {
    %c0 = arith.constant 0 : index
    %c0_0 = arith.constant 0 : index
    %0 = vector.load %arg1[%c0, %c0_0] : memref<8x784xf32, #tpu.memory_space<vmem>>, vector<8x784xf32>
    %1 = arith.truncf %0 : vector<8x784xf32> to vector<8x784xbf16>
    %c0_1 = arith.constant 0 : index
    %c0_2 = arith.constant 0 : index
    %2 = vector.load %arg2[%c0_1, %c0_2] : memref<784x64xbf16, #tpu.memory_space<vmem>>, vector<784x64xbf16>
    %cst = arith.constant dense<0.000000e+00> : vector<8x64xf32>
    %3 = tpu.matmul %1, %2, %cst {dimension_numbers = #tpu.dot_dimension_numbers<[1], [0], [0], [1], [0, 0, 1, 1], [], []>} : vector<8x784xbf16>, vector<784x64xbf16>, vector<8x64xf32> -> vector<8x64xf32>
    %c0_3 = arith.constant 0 : index
    %c0_4 = arith.constant 0 : index
    %4 = vector.load %arg3[%c0_3, %c0_4] : memref<1x64xf32, #tpu.memory_space<vmem>>, vector<1x64xf32>
    %5 = vector.broadcast %4 : vector<1x64xf32> to vector<8x64xf32>
    %6 = arith.addf %3, %5 : vector<8x64xf32>
    %cst_5 = arith.constant 0.000000e+00 : f32
    %7 = vector.broadcast %cst_5 : f32 to vector<8x64xf32>
    %8 = arith.maximumf %6, %7 : vector<8x64xf32>
    %9 = arith.truncf %8 : vector<8x64xf32> to vector<8x64xbf16>
    %c0_6 = arith.constant 0 : index
    %c0_7 = arith.constant 0 : index
    %10 = vector.load %arg4[%c0_6, %c0_7] : memref<64x24xbf16, #tpu.memory_space<vmem>>, vector<64x24xbf16>
    %cst_8 = arith.constant dense<0.000000e+00> : vector<8x24xf32>
    %11 = tpu.matmul %9, %10, %cst_8 {dimension_numbers = #tpu.dot_dimension_numbers<[1], [0], [0], [1], [0, 0, 1, 1], [], []>} : vector<8x64xbf16>, vector<64x24xbf16>, vector<8x24xf32> -> vector<8x24xf32>
    %c0_9 = arith.constant 0 : index
    %c0_10 = arith.constant 0 : index
    %12 = vector.load %arg5[%c0_9, %c0_10] : memref<1x24xf32, #tpu.memory_space<vmem>>, vector<1x24xf32>
    %13 = vector.broadcast %12 : vector<1x24xf32> to vector<8x24xf32>
    %14 = arith.addf %11, %13 : vector<8x24xf32>
    %cst_11 = arith.constant 0.000000e+00 : f32
    %15 = vector.broadcast %cst_11 : f32 to vector<8x24xf32>
    %16 = arith.maximumf %14, %15 : vector<8x24xf32>
    %17 = arith.truncf %16 : vector<8x24xf32> to vector<8x24xbf16>
    %c0_12 = arith.constant 0 : index
    %c0_13 = arith.constant 0 : index
    %18 = vector.load %arg6[%c0_12, %c0_13] : memref<24x10xbf16, #tpu.memory_space<vmem>>, vector<24x10xbf16>
    %cst_14 = arith.constant dense<0.000000e+00> : vector<8x10xf32>
    %19 = tpu.matmul %17, %18, %cst_14 {dimension_numbers = #tpu.dot_dimension_numbers<[1], [0], [0], [1], [0, 0, 1, 1], [], []>} : vector<8x24xbf16>, vector<24x10xbf16>, vector<8x10xf32> -> vector<8x10xf32>
    %c0_15 = arith.constant 0 : index
    %c0_16 = arith.constant 0 : index
    %20 = vector.load %arg7[%c0_15, %c0_16] : memref<1x10xf32, #tpu.memory_space<vmem>>, vector<1x10xf32>
    %21 = vector.broadcast %20 : vector<1x10xf32> to vector<8x10xf32>
    %22 = arith.addf %19, %21 : vector<8x10xf32>
    %cst_17 = arith.constant 0.000000e+00 : f32
    %23 = vector.broadcast %cst_17 : f32 to vector<8x10xf32>
    %24 = arith.maximumf %22, %23 : vector<8x10xf32>
    %c0_18 = arith.constant 0 : index
    %c0_19 = arith.constant 0 : index
    %25 = vector.load %arg8[%c0_18, %c0_19] : memref<8x10xf32, #tpu.memory_space<vmem>>, vector<8x10xf32>
    tpu.vector_store %arg8[%c0_18, %c0_19], %24 {strides = array<i32>} : memref<8x10xf32, #tpu.memory_space<vmem>>, vector<8x10xf32>,
    return
  }
  func.func @transform_0(%arg0: i32) -> (i32, i32) {
    %c0_i32 = arith.constant 0 : i32
    %c0_i32_0 = arith.constant 0 : i32
    return %arg0, %c0_i32 : i32, i32
  }
  func.func @transform_1(%arg0: i32) -> (i32, i32) {
    %c0_i32 = arith.constant 0 : i32
    %c0_i32_0 = arith.constant 0 : i32
    %c0_i32_1 = arith.constant 0 : i32
    return %c0_i32, %c0_i32_0 : i32, i32
  }
  func.func @transform_2(%arg0: i32) -> (i32, i32) {
    %c0_i32 = arith.constant 0 : i32
    %c0_i32_0 = arith.constant 0 : i32
    %c0_i32_1 = arith.constant 0 : i32
    return %c0_i32, %c0_i32_0 : i32, i32
  }
  func.func @transform_3(%arg0: i32) -> (i32, i32) {
    %c0_i32 = arith.constant 0 : i32
    %c0_i32_0 = arith.constant 0 : i32
    %c0_i32_1 = arith.constant 0 : i32
    return %c0_i32, %c0_i32_0 : i32, i32
  }
  func.func @transform_4(%arg0: i32) -> (i32, i32) {
    %c0_i32 = arith.constant 0 : i32
    %c0_i32_0 = arith.constant 0 : i32
    %c0_i32_1 = arith.constant 0 : i32
    return %c0_i32, %c0_i32_0 : i32, i32
  }
  func.func @transform_5(%arg0: i32) -> (i32, i32) {
    %c0_i32 = arith.constant 0 : i32
    %c0_i32_0 = arith.constant 0 : i32
    %c0_i32_1 = arith.constant 0 : i32
    return %c0_i32, %c0_i32_0 : i32, i32
  }
  func.func @transform_6(%arg0: i32) -> (i32, i32) {
    %c0_i32 = arith.constant 0 : i32
    %c0_i32_0 = arith.constant 0 : i32
    %c0_i32_1 = arith.constant 0 : i32
    return %c0_i32, %c0_i32_0 : i32, i32
  }
  func.func @transform_7(%arg0: i32) -> (i32, i32) {
    %c0_i32 = arith.constant 0 : i32
    %c0_i32_0 = arith.constant 0 : i32
    return %arg0, %c0_i32 : i32, i32
  }
}

</mosaic_0001>

<bundles_post_ra>
// kernel: mlp_forward.1
= control target key start
LH: loop header
LB: loop body
LE: loop exit
PB: predicated region body
PF: predicated region fallthrough
CT: control target
= control target key end

     0   :  { %v1021_v44 = vmov 0.0   ;;  %vm1022_vm0 = vmmov 0   ;;  %vm441_vm1 = vcmask 130048   ;;  %s1284_s0 = inlined_call_operand.vmem [shape: f32[8,784], index: 0, kind: input, shape index: {}]   ;;  %s1285_s1 = inlined_call_operand.vmem [shape: bf16[784,64], index: 1, kind: input, shape index: {}]   ;;  %s1286_s2 = inlined_call_operand.vmem [shape: f32[1,64], index: 2, kind: input, shape index: {}]   ;;  %s1287_s3 = inlined_call_operand.vmem [shape: bf16[64,24], index: 3, kind: input, shape index: {}]   ;;  %s1288_s4 = inlined_call_operand.vmem [shape: f32[1,24], index: 4, kind: input, shape index: {}]   ;;  %s1289_s5 = inlined_call_operand.vmem [shape: bf16[24,10], index: 5, kind: input, shape index: {}]   ;;  %s1290_s6 = inlined_call_operand.vmem [shape: f32[1,10], index: 6, kind: input, shape index: {}]   ;;  %s1291_s7 = inlined_call_operand.hbm [shape: f32[8,10], index: 7, kind: output, shape index: {}]  }
   0x1   :  { %v942_v0 = vld [vmem:[%s1285_s1 + $0x40] sm:$0xff]   ;;  %v946_v4 = vld [vmem:[%s1285_s1 + $0x48] sm:$0xff]   ;;  %v950_v8 = vld [vmem:[%s1285_s1 + $0x50] sm:$0xff]  }
   0x2   :  { %v943_v1 = vld [vmem:[%s1285_s1] sm:$0xff]   ;;  %837 = vmatprep.subr.bf16.mxu0 %v942_v0  ;;  %v947_v5 = vld [vmem:[%s1285_s1 + $0x8] sm:$0xff]   ;;  %v951_v9 = vld [vmem:[%s1285_s1 + $0x10] sm:$0xff]  }
   0x3   :  { %v944_v2 = vld [vmem:[%s1285_s1 + $0xc0] sm:$0xff]   ;;  %838 = vmatpush3.bf16.msra.mxu0 %v943_v1  ;;  %v948_v6 = vld [vmem:[%s1285_s1 + $0xc8] sm:$0xff]   ;;  %v952_v10 = vld [vmem:[%s1285_s1 + $0xd0] sm:$0xff]  }
   0x4   :  { %v945_v3 = vld [vmem:[%s1285_s1 + $0x80] sm:$0xff]   ;;  %859 = vmatprep.subr.bf16.mxu1 %v944_v2  ;;  %839 = vmatprep.subr.bf16.mxu0 %v946_v4  ;;  %v949_v7 = vld [vmem:[%s1285_s1 + $0x88] sm:$0xff]   ;;  %v953_v11 = vld [vmem:[%s1285_s1 + $0x90] sm:$0xff]  }
   0x5   :  { %860 = vmatpush3.bf16.msra.mxu1 %v945_v3  ;;  %v954_v12 = vld [vmem:[%s1285_s1 + $0x58] sm:$0xff]   ;;  %v958_v16 = vld [vmem:[%s1285_s1 + $0x60] sm:$0xff]   ;;  %v962_v20 = vld [vmem:[%s1285_s1 + $0x68] sm:$0xff]  }
   0x6   :  { %861 = vmatprep.subr.bf16.mxu1 %v948_v6  ;;  %v955_v13 = vld [vmem:[%s1285_s1 + $0x18] sm:$0xff]   ;;  %v959_v17 = vld [vmem:[%s1285_s1 + $0x20] sm:$0xff]   ;;  %v963_v21 = vld [vmem:[%s1285_s1 + $0x28] sm:$0xff]  }
   0x7   :  { %840 = vmatpush3.bf16.msra.mxu0 %v947_v5  ;;  %v956_v14 = vld [vmem:[%s1285_s1 + $0xd8] sm:$0xff]   ;;  %v960_v18 = vld [vmem:[%s1285_s1 + $0xe0] sm:$0xff]   ;;  %v964_v22 = vld [vmem:[%s1285_s1 + $0xe8] sm:$0xff]  }
   0x8   :  { %841 = vmatprep.subr.bf16.mxu0 %v950_v8  ;;  %v957_v15 = vld [vmem:[%s1285_s1 + $0x98] sm:$0xff]   ;;  %v961_v19 = vld [vmem:[%s1285_s1 + $0xa0] sm:$0xff]   ;;  %v965_v23 = vld [vmem:[%s1285_s1 + $0xa8] sm:$0xff]  }
   0x9   :  { %862 = vmatpush3.bf16.msra.mxu1 %v949_v7  ;;  %v966_v24 = vld [vmem:[%s1285_s1 + $0x70] sm:$0xff]   ;;  %v970_v28 = vld [vmem:[%s1285_s1 + $0x78] sm:$0xff]   ;;  %v29_v31 = vld [vmem:[%s1284_s0 + $0x8] sm:$0xff] }
   0xa   :  { %863 = vmatprep.subr.bf16.mxu1 %v952_v10  ;;  %v967_v25 = vld [vmem:[%s1285_s1 + $0x30] sm:$0xff]   ;;  %v971_v29 = vld [vmem:[%s1285_s1 + $0x38] sm:$0xff]   ;;  %v36_v32 = vpack.c.bf16 %v29_v31, %v29_v31  ;;  %v28_v34 = vld [vmem:[%s1284_s0] sm:$0xff] }
   0xb   :  { %842 = vmatpush3.bf16.msra.mxu0 %v951_v9  ;;  %v968_v26 = vld [vmem:[%s1285_s1 + $0xf0] sm:$0xff]   ;;  %v972_v30 = vld [vmem:[%s1285_s1 + $0xf8] sm:$0xff]   ;;  %v35_v35 = vpack.c.bf16 %v28_v34, %v28_v34  ;;  %v974_v36 = vld [vmem:[%s1285_s1 + $0x140] sm:$0xff]  }
   0xc   :  { %843 = vmatprep.subr.bf16.mxu0 %v954_v12  ;;  %v969_v27 = vld [vmem:[%s1285_s1 + $0xb0] sm:$0xff]   ;;  %v973_v33 = vld [vmem:[%s1285_s1 + $0xb8] sm:$0xff]   ;;  %477 = vmatprep.mubr.bf16.mxu0 %v36_v32  ;;  %v975_v39 = vld [vmem:[%s1285_s1 + $0x100] sm:$0xff]  }
   0xd   :  { %864 = vmatpush3.bf16.msra.mxu1 %v953_v11  ;;  %v31_v37 = vld [vmem:[%s1284_s0 + $0x18] sm:$0xff]  ;;  %v30_v40 = vld [vmem:[%s1284_s0 + $0x10] sm:$0xff]  ;;  %v976_v42 = vld [vmem:[%s1285_s1 + $0x148] sm:$0xff]  }
   0xe   :  { %865 = vmatprep.subr.bf16.mxu1 %v956_v14  ;;  %v38_v38 = vpack.c.bf16 %v31_v37, %v31_v37  ;;  %v37_v41 = vpack.c.bf16 %v30_v40, %v30_v40  ;;  %v977_v43 = vld [vmem:[%s1285_s1 + $0x108] sm:$0xff]   ;;  %v978_v45 = vld [vmem:[%s1285_s1 + $0x150] sm:$0xff]   ;;  %v980_v47 = vld [vmem:[%s1285_s1 + $0x158] sm:$0xff]  }
   0xf   :  { %844 = vmatpush3.bf16.msra.mxu0 %v955_v13  ;;  %v979_v46 = vld [vmem:[%s1285_s1 + $0x110] sm:$0xff]   ;;  %v981_v48 = vld [vmem:[%s1285_s1 + $0x118] sm:$0xff]   ;;  %v982_v49 = vld [vmem:[%s1285_s1 + $0x160] sm:$0xff]  }
  0x10   :  { %845 = vmatprep.subr.bf16.mxu0 %v958_v16  ;;  %517 = vmatprep.mubr.bf16.mxu1 %v38_v38  ;;  %v983_v50 = vld [vmem:[%s1285_s1 + $0x120] sm:$0xff]   ;;  %v984_v51 = vld [vmem:[%s1285_s1 + $0x168] sm:$0xff]   ;;  %v986_v55 = vld [vmem:[%s1285_s1 + $0x170] sm:$0xff]  }
  0x11   :  { %866 = vmatpush3.bf16.msra.mxu1 %v957_v15  ;;  %v985_v52 = vld [vmem:[%s1285_s1 + $0x128] sm:$0xff]   ;;  %v990_v53 = vld [vmem:[%s1285_s1 + $0x180] sm:$0xff]   ;;  %v34_v57 = vld [vmem:[%s1284_s0 + $0x30] sm:$0xff] }
  0x12   :  { %867 = vmatprep.subr.bf16.mxu1 %v960_v18  ;;  %v33_v54 = vld [vmem:[%s1284_s0 + $0x28] sm:$0xff]  ;;  %v41_v58 = vpack.c.bf16 %v34_v57, %v34_v57 }
  0x13   :  { %846 = vmatpush3.bf16.msra.mxu0 %v959_v17  ;;  %v40_v56 = vpack.c.bf16 %v33_v54, %v33_v54 }
  0x14   :  { %847 = vmatprep.subr.bf16.mxu0 %v962_v20 }
  0x15   :  { %868 = vmatpush3.bf16.msra.mxu1 %v961_v19 }
  0x16   :  { %869 = vmatprep.subr.bf16.mxu1 %v964_v22 }
  0x17   :  { %848 = vmatpush3.bf16.msra.mxu0 %v963_v21 }
  0x18   :  { %849 = vmatprep.subr.bf16.mxu0 %v966_v24 }
  0x19   :  { %870 = vmatpush3.bf16.msra.mxu1 %v965_v23 }
  0x1a   :  { %871 = vmatprep.subr.bf16.mxu1 %v968_v26 }
  0x1b   :  { %850 = vmatpush3.bf16.msra.mxu0 %v967_v25 }
  0x1c   :  { %851 = vmatprep.subr.bf16.mxu0 %v970_v28 }
  0x1d   :  { %872 = vmatpush3.bf16.msra.mxu1 %v969_v27 }
  0x1e   :  { %873 = vmatprep.subr.bf16.mxu1 %v972_v30 }
  0x1f   :  { %852 = vmatpush3.bf16.msra.mxu0 %v971_v29 }
  0x20   :  { %881 = vmatprep.subr.bf16.mxu0 %v974_v36 }
  0x21   :  { %874 = vmatpush3.bf16.msra.mxu1 %v973_v33 }
  0x22   :  { %478 = vmatmul.mubr.bf16.vlgmr.msra.gmra.mrb[0].mxu0 %v35_v35  ;;  %913 = vmatprep.subr.bf16.mxu1 %v1021_v44 }
  0x23   :  { %882 = vmatpush3.bf16.msra.mxu0 %v975_v39  ;;  %557 = vmatprep.mubr.bf16.mxu0 %v40_v56 }
  0x24   :  { %518 = vmatmul.mubr.bf16.vlgmr.msra.gmra.mrb[0].mxu1 %v37_v41  ;;  %883 = vmatprep.subr.bf16.mxu0 %v976_v42 }
  0x25   :  { %915 = vmatprep.mubr.msk.bf16.mxu1 %vm1022_vm0, %v1021_v44  ;;  %914 = vmatpush3.bf16.msra.mxu1 %v990_v53 }
  0x26   :  { %919 = vmatprep.subr.bf16.mxu1 %v1021_v44 }
  0x27   :  { %884 = vmatpush3.bf16.msra.mxu0 %v977_v43 }
  0x28   :  { %885 = vmatprep.subr.bf16.mxu0 %v978_v45 }
  0x2b   :  { %886 = vmatpush3.bf16.msra.mxu0 %v979_v46 }
  0x2c   :  { %887 = vmatprep.subr.bf16.mxu0 %v980_v47  ;;  %916 = vmatmul.mubr.msk.bf16.vlgmr.msra.gmra.mrb[4].mxu1 %vm441_vm1, %v41_v58 }
  0x2f   :  { %888 = vmatpush3.bf16.msra.mxu0 %v981_v48 }
  0x30   :  { %889 = vmatprep.subr.bf16.mxu0 %v982_v49 }
  0x33   :  { %890 = vmatpush3.bf16.msra.mxu0 %v983_v50 }
  0x34   :  { %891 = vmatprep.subr.bf16.mxu0 %v984_v51 }
  0x35   :  { %12 = vsyncpa [#allocation3], 0  ;;  %v987_v59 = vld [vmem:[%s1285_s1 + $0x130] sm:$0xff]   ;;  %927 = vmatprep.mubr.msk.bf16.mxu1 %vm1022_vm0, %v1021_v44  ;;  %v988_v60 = vld [vmem:[%s1285_s1 + $0x178] sm:$0xff]   ;;  %vm646_vm2 = vcmask 523264   ;;  %vm715_vm3 = vcmask 1043456  }
  0x36   :  { %v989_v61 = vld [vmem:[%s1285_s1 + $0x138] sm:$0xff]   ;;  %v32_v62 = vld [vmem:[%s1284_s0 + $0x20] sm:$0xff]  ;;  %v992_v1 = vld [vmem:[%s1287_s3 + $0x8] sm:$0xff]   ;;  %vm711_vm4 = vcmask 195584   ;;  %vm760_vm5 = vcmask 80896  }
  0x37   :  { %892 = vmatpush3.bf16.msra.mxu0 %v985_v52  ;;  %v39_v63 = vpack.c.bf16 %v32_v62, %v32_v62  ;;  %v991_v0 = vld [vmem:[%s1287_s3] sm:$0xff]   ;;  %v993_v2 = vld [vmem:[%s1287_s3 + $0x10] sm:$0xff]   ;;  %v994_v3 = vld [vmem:[%s1287_s3 + $0x18] sm:$0xff]  }
  0x38   :  { %893 = vmatprep.subr.bf16.mxu0 %v986_v55  ;;  %920 = vmatpush3.bf16.msra.mxu1 %v991_v0  ;;  %v776_v5 = vld [vmem:[%s1286_s2] ss:$0 sm:$0xff]  ;;  %v996_v31 = vld [vmem:[%s1289_s5 + $0x8] ss:$0 sps:$4 sm:$0xff]  }
  0x39   :  { %921 = vmatprep.subr.bf16.mxu1 %v1021_v44  ;;  %v995_v29 = vld [vmem:[%s1289_s5] sm:$0xff]   ;;  %v717_v32 = vsel %vm715_vm3, %v996_v31, 0  ;;  %s1023_s5 = smov [#allocation2]  }
  0x3a   :  { %v827_v33 = vld [vmem:[%s1288_s4] ss:$0 sm:$0xff]  ;;  %s768_s12 = sshll.u32 %s1023_s5, 4  ;;  %s769_s12 = int_to_ptr.vmem [resolvable:$true] %s768_s12 }
  0x3b   :  { %894 = vmatpush3.bf16.msra.mxu0 %v987_v59  ;;  %v833_v41 = vld [vmem:[%s1290_s6] ss:$0 sm:$0xff]  ;;  %s997_s4 = scalar_lea.vmem %s769_s12, 128  ;;  %p1002_p1 = scmp.lt.s32.totalorder %s769_s12, %s769_s12 }
  0x3c   :  { %895 = vmatprep.subr.bf16.mxu0 %v988_v60  ;;  %922 = vmatpush3.bf16.msra.mxu1 %v992_v1  ;;  %p998_p0 = scmp.ne.s32.totalorder %s769_s12, %s997_s4  ;;  %p1003_p2 = scmp.lt.s32.totalorder %s997_s4, %s997_s4 }
  0x3d   :  { %923 = vmatprep.subr.bf16.mxu1 %v1021_v44 }
  0x3e   :  { %p1004_p3 = por %p1003_p2, %p1002_p1 }
  0x3f   :  { %896 = vmatpush3.bf16.msra.mxu0 %v989_v61 }
  0x40   :  { %924 = vmatpush3.bf16.msra.mxu1 %v993_v2  ;;  %p1005_p4 = pnand %p1004_p3, %p998_p0 }
  0x41   :  { %925 = vmatprep.subr.bf16.mxu1 %v1021_v44 }
  0x42   :  { %558 = vmatmul.mubr.bf16.vlgmr.msra.gmra.mrb[4].mxu0 %v39_v63 }
  0x44   :  { %926 = vmatpush3.bf16.msra.mxu1 %v994_v3 }
  0x45   :  { %931 = vmatprep.subr.bf16.mxu1 %v1021_v44 }
  0xf5   :  { %v853_v4 = vpop.f32.mrb[0].mxu0 }
  0xf6   :  { %v854_v6 = vpop.f32.mrb[1].mxu0 }
  0xf7   :  { %v855_v7 = vadd.f32 %v854_v6, %v853_v4  ;;  %v856_v8 = vpop.f32.mrb[2].mxu0  ;;  %v875_v9 = vpop.f32.mrb[0].mxu1 }
  0xf8   :  { %v857_v10 = vpop.f32.mrb[3].mxu0  ;;  %v876_v12 = vpop.f32.mrb[1].mxu1 }
  0xf9   :  { %v480_v11 = vadd.f32 %v855_v7, %v776_v5  ;;  %v877_v13 = vadd.f32 %v876_v12, %v875_v9  ;;  %v878_v14 = vpop.f32.mrb[2].mxu1 }
  0xfa   :  { %v879_v15 = vpop.f32.mrb[3].mxu1 }
  0xfb   :  { %v520_v16 = vadd.f32 %v877_v13, %v480_v11 }
  0xff   :  { %v599_v17 = vpop.f32.mrb[4].mxu1 }
 0x100   :  { %v917_v18 = vpop.f32.mrb[5].mxu1 }
 0x101   :  { %v602_v19 = vpop.f32.mrb[6].mxu1 }
 0x102   :  { %v918_v20 = vpop.f32.mrb[7].mxu1 }
 0x115   :  { %v897_v21 = vpop.f32.mrb[4].mxu0 }
 0x116   :  { %v898_v22 = vpop.f32.mrb[5].mxu0 }
 0x117   :  { %v899_v23 = vadd.f32 %v898_v22, %v897_v21  ;;  %v900_v24 = vpop.f32.mrb[6].mxu0 }
 0x118   :  { %v901_v25 = vpop.f32.mrb[7].mxu0 }
 0x119   :  { %v560_v26 = vadd.f32 %v899_v23, %v520_v16 }
 0x11b   :  { %v600_v27 = vadd.f32 %v599_v17, %v560_v26 }
 0x11d   :  { %v605_v28 = vmax.f32 %v600_v27, 0.0 }
 0x11f   :  { %v606_v30 = vpack.c.bf16 %v605_v28, %v605_v28 }
 0x121   :  { %928 = vmatmul.mubr.msk.bf16.vlgmr.msra.gmra.mrb[8].mxu1 %vm646_vm2, %v606_v30 }
 0x122   :  { %932 = vmatpush3.bf16.msra.mxu1 %v995_v29  ;;  %935 = vmatprep.mubr.msk.bf16.mxu1 %vm1022_vm0, %v1021_v44 }
 0x123   :  { %933 = vmatprep.subr.bf16.mxu1 %v1021_v44 }
 0x126   :  { %934 = vmatpush3.bf16.msra.mxu1 %v717_v32 }
 0x1f4   :  { %v684_v34 = vpop.f32.mrb[8].mxu1 }
 0x1f5   :  { %v685_v35 = vadd.f32 %v827_v33, %v684_v34  ;;  %v929_v36 = vpop.f32.mrb[9].mxu1 }
 0x1f6   :  { %v687_v37 = vpop.f32.mrb[10].mxu1 }
 0x1f7   :  { %v690_v38 = vmax.f32 %v685_v35, 0.0  ;;  %v930_v39 = vpop.f32.mrb[11].mxu1 }
 0x1f9   :  { %v691_v40 = vpack.c.bf16 %v690_v38, %v690_v38 }
 0x1fb   :  { %936 = vmatmul.mubr.msk.bf16.vlgmr.msra.gmra.mrb[12].mxu1 %vm711_vm4, %v691_v40 }
 0x2ce   :  { %v753_v42 = vpop.f32.mrb[12].mxu1 }
 0x2cf   :  { %v754_v43 = vadd.f32 %v833_v41, %v753_v42  ;;  %v937_v44 = vpop.f32.mrb[13].mxu1 }
 0x2d0   :  { %v756_v45 = vpop.f32.mrb[14].mxu1 }
 0x2d1   :  { %v759_v46 = vmax.f32 %v754_v43, 0.0  ;;  %v938_v47 = vpop.f32.mrb[15].mxu1 }
 0x2d3   :  { %761 = vst.msk [vmem:[#allocation2] sm:$0xff] %vm760_vm5, %v759_v46 }
 0x2d4   :  { %1008 = shalt.err (!%p1005_p4)
}
 0x2d5   :  { %s1009_s14 = scalar_lea.hbm %s1291_s7, 128 }
 0x2d6   :  { %p1010_p5 = scmp.ne.s32.totalorder %s1291_s7, %s1009_s14  ;;  %p1013_p6 = scmp.lt.u32.totalorder %s1009_s14, %s1291_s7 }
 0x2d8   :  { %p1015_p7 = pnand %p1013_p6, %p1010_p5 }
 0x2da   :  { %1018 = shalt.err (!%p1015_p7)
}
 0x2db   :  { %771 = dma.vmem_to_hbm [thread:$0]  %s769_s12, 128, %s1291_s7, [#allocation3]  }
 0x2dc   :  { %1019 = dma.done.wait [#allocation3], 128  }
 0x2dd   :  { %1020 = vsyncadd [#allocation3], 4294967168 }
 0x2de   :  { %775 = vsyncpa [#allocation3], 1 }

</bundles_post_ra>
